<compile_context>
chip_gen: v6e
topology: v6e:2x2x1
jax: 0.10.0
libtpu: 0.0.40
codegen_flags: <defaults>
</compile_context>

<pallas_src>
from functools import partial
import collections

import jax
import jax.numpy as jnp
from jax.experimental import pallas as pl
from jax.experimental.pallas import tpu as pltpu


def _round_up(x: int, m: int) -> int:
    return (x + m - 1) // m * m


# ------------------------------ Pallas kernel -------------------------------- #
def _conv3x3_relu_kernel(x_ref, w_ref, b_ref, o_ref, *, shifts, off):
    """Fused im2col + 3x3 conv + bias + ReLU with lane-dense output.

    x_ref: (Cin_pad, L_in)         bf16  zero-padded input, flat spatial on lanes
    w_ref: (9 * Cout_pad, Cin_pad) f32   tap-major conv weights
    b_ref: (Cout_pad, 1)           f32   bias
    o_ref: (Cout_pad, N_out)       f32   output in padded spatial coordinates
    """
    cout_pad, n_out = o_ref.shape
    l_in = x_ref.shape[1]

    # Roll in 32-bit (lane rotation of sublane-packed 16-bit data is less
    # uniformly supported); the MXU still consumes bf16 operands below.
    x = x_ref[...].astype(jnp.float32)                       # (Cin_pad, L_in)

    acc = jnp.zeros((cout_pad, n_out), jnp.float32)
    for t, s in enumerate(shifts):                           # static unroll: 9 taps
        # result[j] == x[j + s] for every lane we keep (no wrap in [off, off+n_out)).
        xs = x if s == 0 else pltpu.roll(x, shift=(-s) % l_in, axis=1)
        x_tap = xs[:, off:off + n_out].astype(jnp.bfloat16)  # 128-aligned slice
        w_tap = w_ref[t * cout_pad:(t + 1) * cout_pad, :].astype(jnp.bfloat16)
        acc = acc + jnp.dot(w_tap, x_tap, preferred_element_type=jnp.float32)

    acc = acc + b_ref[...]                                   # broadcast over lanes
    o_ref[...] = jnp.maximum(acc, 0.0)                       # f32 epilogue (v5e-safe)


# -------------------------------- JAX glue ------------------------------------ #
@jax.jit
def _conv3x3_relu_forward(x_nchw, weight, bias):
    """Conv2d(k=3, stride=1, SAME zero padding) + ReLU on NCHW input."""
    B, Cin, H, W = x_nchw.shape
    Cout, _, K, _ = weight.shape
    assert K == 3, "inner model is a 3x3 SAME conv"
    pad = K // 2
    Hp, Wp = H + 2 * pad, W + 2 * pad
    S = Hp * Wp                                   # flat padded image size per batch
    cin_pad = _round_up(Cin, 8)
    cout_pad = _round_up(Cout, 8)
    off = _round_up(max(128, Wp + 1), 128)        # front halo (lane aligned)
    n_out = _round_up(B * S, 128)                 # lane-dense output width
    l_in = off + _round_up(n_out + Wp + 1, 128)   # + back halo, lane aligned

    # input: NCHW -> (Cin_pad, B, Hp, Wp) zero-padded -> flat lanes with halos
    x_cb = jnp.transpose(x_nchw, (1, 0, 2, 3))
    x_cb = jnp.pad(x_cb, ((0, cin_pad - Cin), (0, 0), (pad, pad), (pad, pad)))
    x_flat = x_cb.reshape(cin_pad, B * S)
    x_flat = jnp.pad(x_flat, ((0, 0), (off, l_in - off - B * S)))
    x_flat = x_flat.astype(jnp.bfloat16)          # halve HBM bytes of the big operand

    # weights: (Cout, Cin, 3, 3) -> tap-major (9*Cout_pad, Cin_pad), tiny -> keep f32
    w_taps = jnp.transpose(weight, (2, 3, 0, 1)).reshape(K * K, Cout, Cin)
    w_taps = jnp.pad(w_taps, ((0, 0), (0, cout_pad - Cout), (0, cin_pad - Cin)))
    w_mat = w_taps.reshape(K * K * cout_pad, cin_pad).astype(jnp.float32)
    b_col = jnp.pad(bias.astype(jnp.float32), (0, cout_pad - Cout)).reshape(cout_pad, 1)

    # per-tap lane shift inside one flattened padded image: (dy-1)*Wp + (dx-1)
    shifts = tuple((dy - 1) * Wp + (dx - 1) for dy in range(K) for dx in range(K))

    flops = 2 * B * H * W * K * K * Cin * Cout
    bytes_accessed = (x_flat.size * 2 + w_mat.size * 4 + b_col.size * 4
                      + cout_pad * n_out * 4)

    out_flat = pl.pallas_call(
        partial(_conv3x3_relu_kernel, shifts=shifts, off=off),
        out_shape=jax.ShapeDtypeStruct((cout_pad, n_out), jnp.float32),
        in_specs=[
            pl.BlockSpec(memory_space=pltpu.MemorySpace.VMEM),
            pl.BlockSpec(memory_space=pltpu.MemorySpace.VMEM),
            pl.BlockSpec(memory_space=pltpu.MemorySpace.VMEM),
        ],
        out_specs=pl.BlockSpec(memory_space=pltpu.MemorySpace.VMEM),
        cost_estimate=pl.CostEstimate(
            flops=flops, transcendentals=0, bytes_accessed=bytes_accessed),
    )(x_flat, w_mat, b_col)

    # un-pad: (Cout_pad, N_out) -> valid interior -> (B, Cout, H, W)
    out = out_flat[:Cout, :B * S].reshape(Cout, B, Hp, Wp)
    out = out[:, :, pad:pad + H, pad:pad + W]
    return jnp.transpose(out, (1, 0, 2, 3))


# ----------------------------- GhostWrapper ----------------------------------- #
GhostTuple = collections.namedtuple("GhostTuple", ["live", "ghost"])


class GhostWrapper:
    """JAX/Pallas analogue of ghost/ghost_wrapper.GhostWrapper.

    Holds live and ghost parameter sets for the wrapped Conv3x3+ReLU model.
    forward(x) runs the *live* model through the Pallas kernel; the ghost twin
    is only written to (reset_parameters), matching the PyTorch module.
    """

    def __init__(self, live_params):
        self._live_params = live_params
        self._ghost_params = jax.tree_util.tree_map(jnp.array, live_params)
        self.num_params = (
            sum(p.size for p in jax.tree_util.tree_leaves(self._live_params))
            + sum(p.size for p in jax.tree_util.tree_leaves(self._ghost_params)))
        self.reset_parameters()

    @property
    def live(self):
        return self._live_params

    @property
    def ghost(self):
        return self._ghost_params

    @property
    def model(self):
        return GhostTuple(live=self.live, ghost=self.ghost)

    def reset_parameters(self):
        # p.ghost.data.copy_(p.live.data)
        self._ghost_params = jax.tree_util.tree_map(jnp.array, self._live_params)

    def forward(self, x_nchw):
        return _conv3x3_relu_forward(
            x_nchw, self._live_params["weight"], self._live_params["bias"])

    __call__ = forward


# ------------------------------- reference ------------------------------------ #
def _reference_forward(x_nchw, params):
    w, b = params["weight"], params["bias"]
    y = jax.lax.conv_general_dilated(
        x_nchw, w, window_strides=(1, 1), padding="SAME",
        dimension_numbers=("NCHW", "OIHW", "NCHW"))
    return jnp.maximum(y + b[None, :, None, None], 0.0)


if __name__ == "__main__":
    B, Cin, H, W = 2, 4, 16, 16
    Cout, K = 8, 3

    key = jax.random.PRNGKey(0)
    kx, kw, kb = jax.random.split(key, 3)

    live_params = {
        "weight": jax.random.normal(kw, (Cout, Cin, K, K), dtype=jnp.float32) * 0.1,
        "bias": jax.random.normal(kb, (Cout,), dtype=jnp.float32) * 0.1,
    }
    x = jax.random.normal(kx, (B, Cin, H, W), dtype=jnp.float32)

    wrapper = GhostWrapper(live_params)

    out = jax.block_until_ready(wrapper(x))

    ref = _reference_forward(x, wrapper.live)
    assert out.shape == (B, Cout, H, W)
    # bf16 MXU operands with f32 accumulation -> looser tolerance than pure f32.
    assert jnp.allclose(out, ref, atol=5e-2, rtol=5e-2), "mismatch vs reference conv"

    # ghost parameters are an exact copy of live (reset_parameters semantics)
    for k_ in wrapper.live:
        assert jnp.array_equal(wrapper.live[k_], wrapper.ghost[k_])

    print("KERNEL_OK")
</pallas_src>

<mosaic_0001>
module attributes {stable_mosaic.version = 11 : i64} {
  func.func @_conv3x3_relu_kernel(%arg0: memref<8x1024xbf16, #tpu.memory_space<vmem>>, %arg1: memref<72x8xf32, #tpu.memory_space<vmem>>, %arg2: memref<8x1xf32, #tpu.memory_space<vmem>>, %arg3: memref<8x768xf32, #tpu.memory_space<vmem>>) attributes {dimension_semantics = [], scalar_prefetch = 0 : i64, scratch_operands = 0 : i64, tpu.core_type = #tpu.core_type<tc>} {
    %c0 = arith.constant 0 : index
    %c0_0 = arith.constant 0 : index
    %0 = vector.load %arg0[%c0, %c0_0] : memref<8x1024xbf16, #tpu.memory_space<vmem>>, vector<8x1024xbf16>
    %1 = arith.extf %0 : vector<8x1024xbf16> to vector<8x1024xf32>
    %cst = arith.constant 0.000000e+00 : f32
    %2 = vector.broadcast %cst : f32 to vector<8x768xf32>
    %c19_i32 = arith.constant 19 : i32
    %3 = tpu.dynamic_rotate %1 by %c19_i32 dim 1 : vector<8x1024xf32>, i32 -> vector<8x1024xf32>
    %4 = vector.extract_strided_slice %3 {offsets = [0, 128], sizes = [8, 768], strides = [1, 1]} : vector<8x1024xf32> to vector<8x768xf32>
    %5 = arith.truncf %4 : vector<8x768xf32> to vector<8x768xbf16>
    %c0_1 = arith.constant 0 : index
    %c0_2 = arith.constant 0 : index
    %6 = vector.load %arg1[%c0_1, %c0_2] : memref<72x8xf32, #tpu.memory_space<vmem>>, vector<8x8xf32>
    %7 = arith.truncf %6 : vector<8x8xf32> to vector<8x8xbf16>
    %cst_3 = arith.constant dense<0.000000e+00> : vector<8x768xf32>
    %8 = tpu.matmul %7, %5, %cst_3 {dimension_numbers = #tpu.dot_dimension_numbers<[1], [0], [0], [1], [0, 0, 1, 1], [], []>} : vector<8x8xbf16>, vector<8x768xbf16>, vector<8x768xf32> -> vector<8x768xf32>
    %9 = arith.addf %2, %8 : vector<8x768xf32>
    %c18_i32 = arith.constant 18 : i32
    %10 = tpu.dynamic_rotate %1 by %c18_i32 dim 1 : vector<8x1024xf32>, i32 -> vector<8x1024xf32>
    %11 = vector.extract_strided_slice %10 {offsets = [0, 128], sizes = [8, 768], strides = [1, 1]} : vector<8x1024xf32> to vector<8x768xf32>
    %12 = arith.truncf %11 : vector<8x768xf32> to vector<8x768xbf16>
    %c8 = arith.constant 8 : index
    %c0_4 = arith.constant 0 : index
    %13 = vector.load %arg1[%c8, %c0_4] : memref<72x8xf32, #tpu.memory_space<vmem>>, vector<8x8xf32>
    %14 = arith.truncf %13 : vector<8x8xf32> to vector<8x8xbf16>
    %cst_5 = arith.constant dense<0.000000e+00> : vector<8x768xf32>
    %15 = tpu.matmul %14, %12, %cst_5 {dimension_numbers = #tpu.dot_dimension_numbers<[1], [0], [0], [1], [0, 0, 1, 1], [], []>} : vector<8x8xbf16>, vector<8x768xbf16>, vector<8x768xf32> -> vector<8x768xf32>
    %16 = arith.addf %9, %15 : vector<8x768xf32>
    %c17_i32 = arith.constant 17 : i32
    %17 = tpu.dynamic_rotate %1 by %c17_i32 dim 1 : vector<8x1024xf32>, i32 -> vector<8x1024xf32>
    %18 = vector.extract_strided_slice %17 {offsets = [0, 128], sizes = [8, 768], strides = [1, 1]} : vector<8x1024xf32> to vector<8x768xf32>
    %19 = arith.truncf %18 : vector<8x768xf32> to vector<8x768xbf16>
    %c16 = arith.constant 16 : index
    %c0_6 = arith.constant 0 : index
    %20 = vector.load %arg1[%c16, %c0_6] : memref<72x8xf32, #tpu.memory_space<vmem>>, vector<8x8xf32>
    %21 = arith.truncf %20 : vector<8x8xf32> to vector<8x8xbf16>
    %cst_7 = arith.constant dense<0.000000e+00> : vector<8x768xf32>
    %22 = tpu.matmul %21, %19, %cst_7 {dimension_numbers = #tpu.dot_dimension_numbers<[1], [0], [0], [1], [0, 0, 1, 1], [], []>} : vector<8x8xbf16>, vector<8x768xbf16>, vector<8x768xf32> -> vector<8x768xf32>
    %23 = arith.addf %16, %22 : vector<8x768xf32>
    %c1_i32 = arith.constant 1 : i32
    %24 = tpu.dynamic_rotate %1 by %c1_i32 dim 1 : vector<8x1024xf32>, i32 -> vector<8x1024xf32>
    %25 = vector.extract_strided_slice %24 {offsets = [0, 128], sizes = [8, 768], strides = [1, 1]} : vector<8x1024xf32> to vector<8x768xf32>
    %26 = arith.truncf %25 : vector<8x768xf32> to vector<8x768xbf16>
    %c24 = arith.constant 24 : index
    %c0_8 = arith.constant 0 : index
    %27 = vector.load %arg1[%c24, %c0_8] : memref<72x8xf32, #tpu.memory_space<vmem>>, vector<8x8xf32>
    %28 = arith.truncf %27 : vector<8x8xf32> to vector<8x8xbf16>
    %cst_9 = arith.constant dense<0.000000e+00> : vector<8x768xf32>
    %29 = tpu.matmul %28, %26, %cst_9 {dimension_numbers = #tpu.dot_dimension_numbers<[1], [0], [0], [1], [0, 0, 1, 1], [], []>} : vector<8x8xbf16>, vector<8x768xbf16>, vector<8x768xf32> -> vector<8x768xf32>
    %30 = arith.addf %23, %29 : vector<8x768xf32>
    %31 = vector.extract_strided_slice %1 {offsets = [0, 128], sizes = [8, 768], strides = [1, 1]} : vector<8x1024xf32> to vector<8x768xf32>
    %32 = arith.truncf %31 : vector<8x768xf32> to vector<8x768xbf16>
    %c32 = arith.constant 32 : index
    %c0_10 = arith.constant 0 : index
    %33 = vector.load %arg1[%c32, %c0_10] : memref<72x8xf32, #tpu.memory_space<vmem>>, vector<8x8xf32>
    %34 = arith.truncf %33 : vector<8x8xf32> to vector<8x8xbf16>
    %cst_11 = arith.constant dense<0.000000e+00> : vector<8x768xf32>
    %35 = tpu.matmul %34, %32, %cst_11 {dimension_numbers = #tpu.dot_dimension_numbers<[1], [0], [0], [1], [0, 0, 1, 1], [], []>} : vector<8x8xbf16>, vector<8x768xbf16>, vector<8x768xf32> -> vector<8x768xf32>
    %36 = arith.addf %30, %35 : vector<8x768xf32>
    %c1023_i32 = arith.constant 1023 : i32
    %37 = tpu.dynamic_rotate %1 by %c1023_i32 dim 1 : vector<8x1024xf32>, i32 -> vector<8x1024xf32>
    %38 = vector.extract_strided_slice %37 {offsets = [0, 128], sizes = [8, 768], strides = [1, 1]} : vector<8x1024xf32> to vector<8x768xf32>
    %39 = arith.truncf %38 : vector<8x768xf32> to vector<8x768xbf16>
    %c40 = arith.constant 40 : index
    %c0_12 = arith.constant 0 : index
    %40 = vector.load %arg1[%c40, %c0_12] : memref<72x8xf32, #tpu.memory_space<vmem>>, vector<8x8xf32>
    %41 = arith.truncf %40 : vector<8x8xf32> to vector<8x8xbf16>
    %cst_13 = arith.constant dense<0.000000e+00> : vector<8x768xf32>
    %42 = tpu.matmul %41, %39, %cst_13 {dimension_numbers = #tpu.dot_dimension_numbers<[1], [0], [0], [1], [0, 0, 1, 1], [], []>} : vector<8x8xbf16>, vector<8x768xbf16>, vector<8x768xf32> -> vector<8x768xf32>
    %43 = arith.addf %36, %42 : vector<8x768xf32>
    %c1007_i32 = arith.constant 1007 : i32
    %44 = tpu.dynamic_rotate %1 by %c1007_i32 dim 1 : vector<8x1024xf32>, i32 -> vector<8x1024xf32>
    %45 = vector.extract_strided_slice %44 {offsets = [0, 128], sizes = [8, 768], strides = [1, 1]} : vector<8x1024xf32> to vector<8x768xf32>
    %46 = arith.truncf %45 : vector<8x768xf32> to vector<8x768xbf16>
    %c48 = arith.constant 48 : index
    %c0_14 = arith.constant 0 : index
    %47 = vector.load %arg1[%c48, %c0_14] : memref<72x8xf32, #tpu.memory_space<vmem>>, vector<8x8xf32>
    %48 = arith.truncf %47 : vector<8x8xf32> to vector<8x8xbf16>
    %cst_15 = arith.constant dense<0.000000e+00> : vector<8x768xf32>
    %49 = tpu.matmul %48, %46, %cst_15 {dimension_numbers = #tpu.dot_dimension_numbers<[1], [0], [0], [1], [0, 0, 1, 1], [], []>} : vector<8x8xbf16>, vector<8x768xbf16>, vector<8x768xf32> -> vector<8x768xf32>
    %50 = arith.addf %43, %49 : vector<8x768xf32>
    %c1006_i32 = arith.constant 1006 : i32
    %51 = tpu.dynamic_rotate %1 by %c1006_i32 dim 1 : vector<8x1024xf32>, i32 -> vector<8x1024xf32>
    %52 = vector.extract_strided_slice %51 {offsets = [0, 128], sizes = [8, 768], strides = [1, 1]} : vector<8x1024xf32> to vector<8x768xf32>
    %53 = arith.truncf %52 : vector<8x768xf32> to vector<8x768xbf16>
    %c56 = arith.constant 56 : index
    %c0_16 = arith.constant 0 : index
    %54 = vector.load %arg1[%c56, %c0_16] : memref<72x8xf32, #tpu.memory_space<vmem>>, vector<8x8xf32>
    %55 = arith.truncf %54 : vector<8x8xf32> to vector<8x8xbf16>
    %cst_17 = arith.constant dense<0.000000e+00> : vector<8x768xf32>
    %56 = tpu.matmul %55, %53, %cst_17 {dimension_numbers = #tpu.dot_dimension_numbers<[1], [0], [0], [1], [0, 0, 1, 1], [], []>} : vector<8x8xbf16>, vector<8x768xbf16>, vector<8x768xf32> -> vector<8x768xf32>
    %57 = arith.addf %50, %56 : vector<8x768xf32>
    %c1005_i32 = arith.constant 1005 : i32
    %58 = tpu.dynamic_rotate %1 by %c1005_i32 dim 1 : vector<8x1024xf32>, i32 -> vector<8x1024xf32>
    %59 = vector.extract_strided_slice %58 {offsets = [0, 128], sizes = [8, 768], strides = [1, 1]} : vector<8x1024xf32> to vector<8x768xf32>
    %60 = arith.truncf %59 : vector<8x768xf32> to vector<8x768xbf16>
    %c64 = arith.constant 64 : index
    %c0_18 = arith.constant 0 : index
    %61 = vector.load %arg1[%c64, %c0_18] : memref<72x8xf32, #tpu.memory_space<vmem>>, vector<8x8xf32>
    %62 = arith.truncf %61 : vector<8x8xf32> to vector<8x8xbf16>
    %cst_19 = arith.constant dense<0.000000e+00> : vector<8x768xf32>
    %63 = tpu.matmul %62, %60, %cst_19 {dimension_numbers = #tpu.dot_dimension_numbers<[1], [0], [0], [1], [0, 0, 1, 1], [], []>} : vector<8x8xbf16>, vector<8x768xbf16>, vector<8x768xf32> -> vector<8x768xf32>
    %64 = arith.addf %57, %63 : vector<8x768xf32>
    %c0_20 = arith.constant 0 : index
    %c0_21 = arith.constant 0 : index
    %65 = vector.load %arg2[%c0_20, %c0_21] : memref<8x1xf32, #tpu.memory_space<vmem>>, vector<8x1xf32>
    %66 = vector.broadcast %65 : vector<8x1xf32> to vector<8x768xf32>
    %67 = arith.addf %64, %66 : vector<8x768xf32>
    %cst_22 = arith.constant 0.000000e+00 : f32
    %68 = vector.broadcast %cst_22 : f32 to vector<8x768xf32>
    %69 = arith.maximumf %67, %68 : vector<8x768xf32>
    %c0_23 = arith.constant 0 : index
    %c0_24 = arith.constant 0 : index
    %70 = vector.load %arg3[%c0_23, %c0_24] : memref<8x768xf32, #tpu.memory_space<vmem>>, vector<8x768xf32>
    tpu.vector_store %arg3[%c0_23, %c0_24], %69 {strides = array<i32>} : memref<8x768xf32, #tpu.memory_space<vmem>>, vector<8x768xf32>,
    return
  }
}

</mosaic_0001>

<bundles_post_ra>
// kernel: _conv3x3_relu_forward.1
= control target key start
LH: loop header
LB: loop body
LE: loop exit
PB: predicated region body
PF: predicated region fallthrough
CT: control target
= control target key end

     0   :  { %s1833_s20 = smov 18   ;;  %v1834_v14 = vmov 0   ;;  %s1835_s21 = smov 19   ;;  %v41_v21 = vlaneseq  ;;  %vm91_vm1 = vcmask 1043456   ;;  %vm87_vm3 = vcmask 64512   ;;  %s2216_s0 = inlined_call_operand.vmem [shape: bf16[8,1024], index: 0, kind: input, shape index: {}]   ;;  %s2217_s2 = inlined_call_operand.vmem [shape: f32[8,1], index: 2, kind: input, shape index: {}]   ;;  %s2218_s1 = inlined_call_operand.vmem [shape: f32[72,8], index: 1, kind: input, shape index: {}]   ;;  %s2219_s3 = inlined_call_operand.vmem [shape: f32[8,768], index: 3, kind: output, shape index: {}]  }
   0x1   :  { %v1865_v0 = vld [vmem:[%s2216_s0] sm:$0xff]  ;;  %v1870_v1 = vld [vmem:[%s2216_s0 + $0x8] sm:$0xff]  ;;  %v1875_v2 = vld [vmem:[%s2216_s0 + $0x10] sm:$0xff]  ;;  %142 = vmatprep.mubr.bf16.mxu0 %v1834_v14  ;;  %183 = vmatprep.mubr.bf16.mxu1 %v1834_v14  ;;  %s1837_s22 = smov 1   ;;  %s1838_s23 = smov 127  }
   0x2   :  { %v19_v3 = vunpack.c.l.bf16 %v1865_v0  ;;  %v20_v4 = vunpack.c.h.bf16 %v1865_v0  ;;  %v21_v5 = vunpack.c.l.bf16 %v1870_v1  ;;  %v22_v6 = vunpack.c.h.bf16 %v1870_v1  ;;  %v1886_v9 = vld [vmem:[%s2216_s0 + $0x18] sm:$0xff]  ;;  %1826 = vset.pattern.permute.xlu0 %v1834_v14  ;;  %s1836_s0 = smov 17   ;;  %s1839_s24 = smov 111   ;;  %v1609_v20 = vld [vmem:[%s2217_s2] sm:$0xff]  ;;  %v85_v37 = vld [vmem:[%s2218_s1 + $0x8] sm:$0xff] }
   0x3   :  { %v23_v7 = vunpack.c.l.bf16 %v1875_v2  ;;  %v24_v8 = vunpack.c.h.bf16 %v1875_v2  ;;  %v25_v13 = vunpack.c.l.bf16 %v1886_v9  ;;  %v26_v18 = vunpack.c.h.bf16 %v1886_v9  ;;  %s1840_s25 = smov 110   ;;  %s1841_s26 = smov 109  }
   0x4   :  { %v1706_v10 = vpack.i.bf16 %v20_v4, %v19_v3  ;;  %v1711_v12 = vpack.i.bf16 %v22_v6, %v21_v5  ;;  %v1766_v16 = vpack.i.bf16 %v21_v5, %v20_v4  ;;  %v1896_v22 = vand.u32 127, %v41_v21 }
   0x5   :  { %v1716_v11 = vpack.i.bf16 %v24_v8, %v23_v7  ;;  %v1761_v15 = vpack.i.bf16 %v25_v13, %v24_v8  ;;  %v1771_v17 = vpack.i.bf16 %v23_v7, %v22_v6  ;;  %v1821_v19 = vpack.i.bf16 %v26_v18, %v25_v13  ;;  %v56_v8 = vld [vmem:[%s2218_s1] sm:$0xff] }
   0x6   :  { %1707 = vrot.lane.b32.xlu0 %v1706_v10, %s1833_s20  ;;  %vm72_vm0 = vcmp.lt.s32.totalorder %v1896_v22, 18  ;;  %vm43_vm2 = vcmp.lt.s32.totalorder %v1896_v22, 19  ;;  %v86_v50 = vpack.c.bf16 %v85_v37, %v85_v37  ;;  %vm391_vm4 = vcmp.lt.s32.totalorder %v1896_v22, 17 }
   0x7   :  { %1717 = vrot.lane.b32.xlu1 %v1716_v11, %s1833_s20  ;;  %vm570_vm5 = vcmp.lt.s32.totalorder %v1896_v22, 1  ;;  %vm907_vm6 = vcmp.lt.s32.totalorder %v1896_v22, 127  ;;  %vm1086_vm7 = vcmp.lt.s32.totalorder %v1896_v22, 111  ;;  %vm1265_vm8 = vcmp.lt.s32.totalorder %v1896_v22, 110 }
   0x8   :  { %vm1444_vm9 = vcmp.lt.s32.totalorder %v1896_v22, 109 }
   0xa   :  { %1712 = vrot.lane.b32.xlu0 %v1711_v12, %s1833_s20 }
   0xb   :  { %70 = vrot.lane.b32.xlu1 %v25_v13, %s1833_s20 }
   0xe   :  { %1722 = vrot.lane.b32.xlu0 %v1706_v10, %s1835_s21 }
   0xf   :  { %1727 = vrot.lane.b32.xlu1 %v1711_v12, %s1835_s21 }
  0x12   :  { %1732 = vrot.lane.b32.xlu0 %v1716_v11, %s1835_s21 }
  0x13   :  { %39 = vrot.lane.b32.xlu1 %v25_v13, %s1835_s21 }
  0x16   :  { %1737 = vrot.lane.b32.xlu0 %v1706_v10, %s1836_s0 }
  0x17   :  { %1742 = vrot.lane.b32.xlu1 %v1711_v12, %s1836_s0 }
  0x1a   :  { %1747 = vrot.lane.b32.xlu0 %v1716_v11, %s1836_s0 }
  0x1b   :  { %389 = vrot.lane.b32.xlu1 %v25_v13, %s1836_s0 }
  0x1e   :  { %1752 = vrot.lane.b32.xlu0 %v1706_v10, %s1837_s22 }
  0x1f   :  { %1757 = vrot.lane.b32.xlu1 %v1711_v12, %s1837_s22 }
  0x22   :  { %564 = vrot.lane.b32.xlu0 %v23_v7, %s1837_s22 }
  0x23   :  { %1762 = vrot.lane.b32.xlu1 %v1761_v15, %s1837_s22 }
  0x26   :  { %1767 = vrot.lane.b32.xlu0 %v1766_v16, %s1838_s23 }
  0x27   :  { %1772 = vrot.lane.b32.xlu1 %v1771_v17, %s1838_s23 }
  0x2a   :  { %1777 = vrot.lane.b32.xlu0 %v1761_v15, %s1838_s23 }
  0x2b   :  { %905 = vrot.lane.b32.xlu1 %v26_v18, %s1838_s23 }
  0x2e   :  { %1782 = vrot.lane.b32.xlu0 %v1766_v16, %s1839_s24 }
  0x2f   :  { %1787 = vrot.lane.b32.xlu1 %v1771_v17, %s1839_s24 }
  0x32   :  { %1792 = vrot.lane.b32.xlu0 %v1761_v15, %s1839_s24 }
  0x33   :  { %1084 = vrot.lane.b32.xlu1 %v26_v18, %s1839_s24 }
  0x36   :  { %1797 = vrot.lane.b32.xlu0 %v1766_v16, %s1840_s25 }
  0x37   :  { %1802 = vrot.lane.b32.xlu1 %v1771_v17, %s1840_s25 }
  0x3a   :  { %1807 = vrot.lane.b32.xlu0 %v1761_v15, %s1840_s25 }
  0x3b   :  { %1263 = vrot.lane.b32.xlu1 %v26_v18, %s1840_s25 }
  0x3e   :  { %1812 = vrot.lane.b32.xlu0 %v1766_v16, %s1841_s26 }
  0x3f   :  { %1434 = vrot.lane.b32.xlu1 %v22_v6, %s1841_s26 }
  0x42   :  { %1817 = vrot.lane.b32.xlu0 %v1716_v11, %s1841_s26 }
  0x43   :  { %1822 = vrot.lane.b32.xlu1 %v1821_v19, %s1841_s26  ;;  %v57_v19 = vpack.c.bf16 %v56_v8, %v56_v8 }
  0x46   :  { %1612 = vperm.xlu0 %1826, %v1609_v20  }
  0x78   :  { %v1708_v23 = vpop.permute.xlu0 %1707 }
  0x79   :  { %v1710_v24 = vunpack.i.h.bf16 %v1708_v23  ;;  %v1709_v25 = vunpack.i.l.bf16 %v1708_v23  ;;  %v1718_v26 = vpop.permute.xlu1 %1717 }
  0x7a   :  { %v1720_v27 = vunpack.i.h.bf16 %v1718_v26  ;;  %v1719_v28 = vunpack.i.l.bf16 %v1718_v26 }
  0x7b   :  { %v78_v29 = vsel %vm72_vm0, %v1709_v25, %v1710_v24 }
  0x7c   :  { %v1713_v30 = vpop.permute.xlu0 %1712  ;;  %v74_v31 = vsel %vm72_vm0, %v1719_v28, %v1720_v27  ;;  %v79_v36 = vpack.c.bf16 %v78_v29, %v78_v29 }
  0x7d   :  { %v1715_v32 = vunpack.i.h.bf16 %v1713_v30  ;;  %v1714_v33 = vunpack.i.l.bf16 %v1713_v30  ;;  %v71_v34 = vpop.permute.xlu1 %70  ;;  %v83_v41 = vpack.c.bf16 %v74_v31, %v74_v31 }
  0x7e   :  { %v73_v35 = vsel %vm72_vm0, %v1720_v27, %v71_v34  ;;  %v93_v51 = vsel %vm91_vm1, %v79_v36, 0 }
  0x7f   :  { %v77_v38 = vsel %vm72_vm0, %v1710_v24, %v1714_v33  ;;  %v75_v39 = vsel %vm72_vm0, %v1715_v32, %v1719_v28  ;;  %v76_v40 = vsel %vm72_vm0, %v1714_v33, %v1715_v32  ;;  %v84_v42 = vpack.c.bf16 %v73_v35, %v73_v35 }
  0x80   :  { %v80_v43 = vpack.c.bf16 %v77_v38, %v77_v38  ;;  %v82_v44 = vpack.c.bf16 %v75_v39, %v75_v39  ;;  %v81_v45 = vpack.c.bf16 %v76_v40, %v76_v40  ;;  %v1723_v46 = vpop.permute.xlu0 %1722  ;;  %v105_v57 = vsel %vm91_vm1, %v83_v41, 0 }
  0x81   :  { %v1728_v47 = vpop.permute.xlu1 %1727  ;;  %v1725_v48 = vunpack.i.h.bf16 %v1723_v46  ;;  %v1724_v49 = vunpack.i.l.bf16 %v1723_v46 }
  0x82   :  { %1637 = vmatprep.subr.msk.bf16.mxu0 %vm91_vm1, %v80_v43  ;;  %1639 = vmatprep.subr.msk.bf16.mxu1 %vm91_vm1, %v82_v44  ;;  %v99_v52 = vsel %vm91_vm1, %v81_v45, 0  ;;  %v1730_v53 = vunpack.i.h.bf16 %v1728_v47  ;;  %v1729_v54 = vunpack.i.l.bf16 %v1728_v47 }
  0x83   :  { %125 = vmatpush1.bf16.msra.mxu0 %v93_v51  ;;  %166 = vmatpush1.bf16.msra.mxu1 %v99_v52  ;;  %v49_v55 = vsel %vm43_vm2, %v1724_v49, %v1725_v48 }
  0x84   :  { %v48_v56 = vsel %vm43_vm2, %v1725_v48, %v1729_v54  ;;  %1641 = vmatprep.subr.msk.bf16.mxu0 %vm91_vm1, %v84_v42  ;;  %v1733_v58 = vpop.permute.xlu0 %1732  ;;  %v50_v59 = vpack.c.bf16 %v49_v55, %v49_v55  ;;  %v47_v60 = vsel %vm43_vm2, %v1729_v54, %v1730_v53  ;;  %v404_v54 = vld [vmem:[%s2218_s1 + $0x10] sm:$0xff] }
  0x85   :  { %v51_v61 = vpack.c.bf16 %v48_v56, %v48_v56  ;;  %v1735_v62 = vunpack.i.h.bf16 %v1733_v58  ;;  %v1734_v63 = vunpack.i.l.bf16 %v1733_v58  ;;  %v40_v3 = vpop.permute.xlu1 %39  ;;  %v52_v5 = vpack.c.bf16 %v47_v60, %v47_v60 }
  0x86   :  { %1638 = vmatmul.mubr.msk.bf16.vlgmr.msra.gmra.mxu0 %vm87_vm3, %v86_v50  ;;  %1640 = vmatmul.mubr.msk.bf16.vlgmr.msra.gmra.mxu1 %vm87_vm3, %v86_v50  ;;  %v237_v4 = vsel %vm91_vm1, %v50_v59, 0  ;;  %v405_v58 = vpack.c.bf16 %v404_v54, %v404_v54 }
  0x87   :  { %207 = vmatpush1.bf16.msra.mxu0 %v105_v57  ;;  %v46_v6 = vsel %vm43_vm2, %v1730_v53, %v1734_v63  ;;  %v44_v7 = vsel %vm43_vm2, %v1735_v62, %v40_v3  ;;  %1643 = vmatprep.subr.msk.bf16.mxu1 %vm91_vm1, %v51_v61  ;;  %v45_v10 = vsel %vm43_vm2, %v1734_v63, %v1735_v62  ;;  %v243_v23 = vsel %vm91_vm1, %v52_v5, 0 }
  0x88   :  { %v53_v11 = vpack.c.bf16 %v46_v6, %v46_v6  ;;  %v55_v12 = vpack.c.bf16 %v44_v7, %v44_v7  ;;  %269 = vmatpush1.bf16.msra.mxu1 %v237_v4  ;;  %v1738_v13 = vpop.permute.xlu0 %1737  ;;  %224 = vmatprep.mubr.bf16.mxu0 %v1834_v14  ;;  %v54_v15 = vpack.c.bf16 %v45_v10, %v45_v10  ;;  %v583_v6 = vld [vmem:[%s2218_s1 + $0x18] sm:$0xff] }
  0x89   :  { %v1740_v16 = vunpack.i.h.bf16 %v1738_v13  ;;  %v1739_v17 = vunpack.i.l.bf16 %v1738_v13  ;;  %286 = vmatprep.mubr.bf16.mxu1 %v1834_v14  ;;  %v1743_v18 = vpop.permute.xlu1 %1742  ;;  %v584_v10 = vpack.c.bf16 %v583_v6, %v583_v6 }
  0x8a   :  { %1645 = vmatprep.subr.msk.bf16.mxu0 %vm91_vm1, %v53_v11  ;;  %1647 = vmatprep.subr.msk.bf16.mxu1 %vm91_vm1, %v55_v12  ;;  %v1745_v20 = vunpack.i.h.bf16 %v1743_v18  ;;  %v1744_v21 = vunpack.i.l.bf16 %v1743_v18  ;;  %v249_v24 = vsel %vm91_vm1, %v54_v15, 0 }
  0x8b   :  { %v397_v29 = vsel %vm391_vm4, %v1739_v17, %v1740_v16  ;;  %v1664_v17 = vcombine.low %v1875_v2, %v1875_v2 }
  0x8c   :  { %v396_v25 = vsel %vm391_vm4, %v1740_v16, %v1744_v21  ;;  %v1748_v26 = vpop.permute.xlu0 %1747  ;;  %v395_v30 = vsel %vm391_vm4, %v1744_v21, %v1745_v20  ;;  %v398_v35 = vpack.c.bf16 %v397_v29, %v397_v29  ;;  %v1662_v16 = vcombine.low %v1870_v1, %v1870_v1 }
  0x8d   :  { %v399_v27 = vpack.c.bf16 %v396_v25, %v396_v25  ;;  %v1749_v28 = vunpack.i.l.bf16 %v1748_v26  ;;  %v390_v31 = vpop.permute.xlu1 %389  ;;  %v1750_v32 = vunpack.i.h.bf16 %v1748_v26  ;;  %v400_v36 = vpack.c.bf16 %v395_v30, %v395_v30 }
  0x8e   :  { %1642 = vmatmul.mubr.msk.bf16.vlgmr.msra.gmra.mxu0 %vm87_vm3, %v86_v50  ;;  %1644 = vmatmul.mubr.msk.bf16.vlgmr.msra.gmra.mxu1 %vm87_vm3, %v57_v19  ;;  %v410_v43 = vsel %vm91_vm1, %v398_v35, 0  ;;  %v1661_v21 = vcombine.high %v1865_v0, %v1865_v0  ;;  %v1666_v0 = vcombine.low %v1886_v9, %v1886_v9  ;;  %v1665_v9 = vcombine.high %v1875_v2, %v1875_v2 }
  0x8f   :  { %310 = vmatpush1.bf16.msra.mxu0 %v243_v23  ;;  %351 = vmatpush1.bf16.msra.mxu1 %v249_v24  ;;  %v394_v33 = vsel %vm391_vm4, %v1745_v20, %v1749_v28  ;;  %v392_v41 = vsel %vm391_vm4, %v1750_v32, %v390_v31  ;;  %v416_v44 = vsel %vm91_vm1, %v400_v36, 0  ;;  %v393_v48 = vsel %vm391_vm4, %v1749_v28, %v1750_v32 }
  0x90   :  { %v401_v34 = vpack.c.bf16 %v394_v33, %v394_v33  ;;  %327 = vmatprep.mubr.bf16.mxu0 %v1834_v14  ;;  %368 = vmatprep.mubr.bf16.mxu1 %v1834_v14  ;;  %v1753_v37 = vpop.permute.xlu0 %1752  ;;  %v403_v46 = vpack.c.bf16 %v392_v41, %v392_v41  ;;  %v402_v56 = vpack.c.bf16 %v393_v48, %v393_v48  ;;  %v759_v41 = vsel %vm91_vm1, %v1665_v9, 0 }
  0x91   :  { %1649 = vmatprep.subr.msk.bf16.mxu0 %vm91_vm1, %v399_v27  ;;  %v1758_v38 = vpop.permute.xlu1 %1757  ;;  %v1755_v39 = vunpack.i.h.bf16 %v1753_v37  ;;  %v1754_v40 = vunpack.i.l.bf16 %v1753_v37  ;;  %v1663_v23 = vcombine.high %v1870_v1, %v1870_v1  ;;  %v747_v27 = vsel %vm91_vm1, %v1661_v21, 0 }
  0x92   :  { %1651 = vmatprep.subr.msk.bf16.mxu1 %vm91_vm1, %v401_v34  ;;  %v1759_v42 = vunpack.i.l.bf16 %v1758_v38  ;;  %v1760_v51 = vunpack.i.h.bf16 %v1758_v38  ;;  %v422_v61 = vsel %vm91_vm1, %v402_v56, 0  ;;  %v741_v34 = vld [vmem:[%s2218_s1 + $0x20] sm:$0xff] }
  0x93   :  { %v576_v50 = vsel %vm570_vm5, %v1754_v40, %v1755_v39  ;;  %v753_v28 = vsel %vm91_vm1, %v1663_v23, 0  ;;  %v742_v37 = vpack.c.bf16 %v741_v34, %v741_v34 }
  0x94   :  { %v575_v45 = vsel %vm570_vm5, %v1755_v39, %v1759_v42  ;;  %v565_v55 = vpop.permute.xlu0 %564  ;;  %v577_v57 = vpack.c.bf16 %v576_v50, %v576_v50  ;;  %v574_v5 = vsel %vm570_vm5, %v1759_v42, %v1760_v51 }
  0x95   :  { %v578_v47 = vpack.c.bf16 %v575_v45, %v575_v45  ;;  %v1763_v49 = vpop.permute.xlu1 %1762  ;;  %v573_v60 = vsel %vm570_vm5, %v1760_v51, %v565_v55  ;;  %v579_v8 = vpack.c.bf16 %v574_v5, %v574_v5  ;;  %v920_v51 = vld [vmem:[%s2218_s1 + $0x28] sm:$0xff] }
  0x96   :  { %1646 = vmatmul.mubr.msk.bf16.vlgmr.msra.gmra.mxu0 %vm87_vm3, %v57_v19  ;;  %1648 = vmatmul.mubr.msk.bf16.vlgmr.msra.gmra.mxu1 %vm87_vm3, %v57_v19  ;;  %v1765_v52 = vunpack.i.h.bf16 %v1763_v49  ;;  %v1764_v53 = vunpack.i.l.bf16 %v1763_v49  ;;  %v589_v62 = vsel %vm91_vm1, %v577_v57, 0  ;;  %v580_v4 = vpack.c.bf16 %v573_v60, %v573_v60 }
  0x97   :  { %442 = vmatpush1.bf16.msra.mxu0 %v410_v43  ;;  %483 = vmatpush1.bf16.msra.mxu1 %v416_v44  ;;  %v595_v13 = vsel %vm91_vm1, %v579_v8, 0 }
  0x98   :  { %459 = vmatprep.mubr.bf16.mxu0 %v1834_v14  ;;  %500 = vmatprep.mubr.bf16.mxu1 %v1834_v14  ;;  %v571_v59 = vsel %vm570_vm5, %v1764_v53, %v1765_v52  ;;  %v572_v3 = vsel %vm570_vm5, %v565_v55, %v1764_v53  ;;  %v1768_v12 = vpop.permute.xlu0 %1767  ;;  %v921_v55 = vpack.c.bf16 %v920_v51, %v920_v51 }
  0x99   :  { %1653 = vmatprep.subr.msk.bf16.mxu0 %vm91_vm1, %v403_v46  ;;  %1655 = vmatprep.subr.msk.bf16.mxu1 %vm91_vm1, %v578_v47  ;;  %v582_v63 = vpack.c.bf16 %v571_v59, %v571_v59  ;;  %v581_v7 = vpack.c.bf16 %v572_v3, %v572_v3  ;;  %v1773_v11 = vpop.permute.xlu1 %1772  ;;  %v1770_v19 = vunpack.i.h.bf16 %v1768_v12  ;;  %v1769_v24 = vunpack.i.l.bf16 %v1768_v12 }
  0x9a   :  { %v1774_v18 = vunpack.i.l.bf16 %v1773_v11  ;;  %v1775_v31 = vunpack.i.h.bf16 %v1773_v11 }
  0x9b   :  { %v601_v15 = vsel %vm91_vm1, %v581_v7, 0  ;;  %v913_v1 = vsel %vm907_vm6, %v1769_v24, %v1770_v19 }
  0x9c   :  { %v1778_v20 = vpop.permute.xlu0 %1777  ;;  %v912_v25 = vsel %vm907_vm6, %v1770_v19, %v1774_v18  ;;  %v914_v36 = vpack.c.bf16 %v913_v1, %v913_v1  ;;  %v911_v2 = vsel %vm907_vm6, %v1774_v18, %v1775_v31 }
  0x9d   :  { %v906_v26 = vpop.permute.xlu1 %905  ;;  %v915_v29 = vpack.c.bf16 %v912_v25, %v912_v25  ;;  %v1780_v32 = vunpack.i.h.bf16 %v1778_v20  ;;  %v1779_v33 = vunpack.i.l.bf16 %v1778_v20  ;;  %v916_v52 = vpack.c.bf16 %v911_v2, %v911_v2 }
  0x9e   :  { %1650 = vmatmul.mubr.msk.bf16.vlgmr.msra.gmra.mxu0 %vm87_vm3, %v405_v58  ;;  %1652 = vmatmul.mubr.msk.bf16.vlgmr.msra.gmra.mxu1 %vm87_vm3, %v405_v58  ;;  %v926_v42 = vsel %vm91_vm1, %v914_v36, 0 }
  0x9f   :  { %524 = vmatpush1.bf16.msra.mxu0 %v422_v61  ;;  %621 = vmatpush1.bf16.msra.mxu1 %v589_v62  ;;  %v910_v38 = vsel %vm907_vm6, %v1775_v31, %v1779_v33  ;;  %v908_v39 = vsel %vm907_vm6, %v1780_v32, %v906_v26  ;;  %v909_v45 = vsel %vm907_vm6, %v1779_v33, %v1780_v32  ;;  %v932_v60 = vsel %vm91_vm1, %v916_v52, 0 }
  0xa0   :  { %541 = vmatprep.mubr.bf16.mxu0 %v1834_v14  ;;  %638 = vmatprep.mubr.bf16.mxu1 %v1834_v14  ;;  %v1783_v30 = vpop.permute.xlu0 %1782  ;;  %v917_v43 = vpack.c.bf16 %v910_v38, %v910_v38  ;;  %v919_v44 = vpack.c.bf16 %v908_v39, %v908_v39  ;;  %v918_v53 = vpack.c.bf16 %v909_v45, %v909_v45 }
  0xa1   :  { %1657 = vmatprep.subr.msk.bf16.mxu0 %vm91_vm1, %v580_v4  ;;  %1659 = vmatprep.subr.msk.bf16.mxu1 %vm91_vm1, %v582_v63  ;;  %v1788_v35 = vpop.permute.xlu1 %1787  ;;  %v1785_v47 = vunpack.i.h.bf16 %v1783_v30  ;;  %v1784_v54 = vunpack.i.l.bf16 %v1783_v30 }
  0xa2   :  { %v1790_v48 = vunpack.i.h.bf16 %v1788_v35  ;;  %v1789_v49 = vunpack.i.l.bf16 %v1788_v35  ;;  %v938_v61 = vsel %vm91_vm1, %v918_v53, 0 }
  0xa3   :  { %v1092_v3 = vsel %vm1086_vm7, %v1784_v54, %v1785_v47 }
  0xa4   :  { %v1793_v40 = vpop.permute.xlu0 %1792  ;;  %v1091_v56 = vsel %vm1086_vm7, %v1785_v47, %v1789_v49  ;;  %v1090_v4 = vsel %vm1086_vm7, %v1789_v49, %v1790_v48 }
  0xa5   :  { %v1085_v46 = vpop.permute.xlu1 %1084  ;;  %v1794_v50 = vunpack.i.l.bf16 %v1793_v40  ;;  %v1094_v62 = vpack.c.bf16 %v1091_v56, %v1091_v56  ;;  %v1795_v5 = vunpack.i.h.bf16 %v1793_v40  ;;  %v1095_v11 = vpack.c.bf16 %v1090_v4, %v1090_v4 }
  0xa6   :  { %1654 = vmatmul.mubr.msk.bf16.vlgmr.msra.gmra.mxu0 %vm87_vm3, %v405_v58  ;;  %1656 = vmatmul.mubr.msk.bf16.vlgmr.msra.gmra.mxu1 %vm87_vm3, %v584_v10 }
  0xa7   :  { %662 = vmatpush1.bf16.msra.mxu0 %v595_v13  ;;  %703 = vmatpush1.bf16.msra.mxu1 %v601_v15  ;;  %v1089_v57 = vsel %vm1086_vm7, %v1790_v48, %v1794_v50  ;;  %v1087_v13 = vsel %vm1086_vm7, %v1795_v5, %v1085_v46  ;;  %v1088_v20 = vsel %vm1086_vm7, %v1794_v50, %v1795_v5 }
  0xa8   :  { %679 = vmatprep.mubr.bf16.mxu0 %v1834_v14  ;;  %720 = vmatprep.mubr.bf16.mxu1 %v1834_v14  ;;  %v1798_v59 = vpop.permute.xlu0 %1797  ;;  %v1096_v63 = vpack.c.bf16 %v1089_v57, %v1089_v57  ;;  %v1098_v18 = vpack.c.bf16 %v1087_v13, %v1087_v13 }
  0xa9   :  { %1667 = vmatprep.subr.msk.bf16.mxu0 %vm91_vm1, %v1662_v16  ;;  %1669 = vmatprep.subr.msk.bf16.mxu1 %vm91_vm1, %v1664_v17  ;;  %v1803_v58 = vpop.permute.xlu1 %1802  ;;  %v1800_v7 = vunpack.i.h.bf16 %v1798_v59  ;;  %v1799_v12 = vunpack.i.l.bf16 %v1798_v59  ;;  %v1111_v17 = vsel %vm91_vm1, %v1095_v11, 0 }
  0xaa   :  { %v1804_v6 = vunpack.i.l.bf16 %v1803_v58  ;;  %v1805_v24 = vunpack.i.h.bf16 %v1803_v58 }
  0xab   :  { %v1271_v21 = vsel %vm1265_vm8, %v1799_v12, %v1800_v7 }
  0xac   :  { %v1808_v8 = vpop.permute.xlu0 %1807  ;;  %v1270_v15 = vsel %vm1265_vm8, %v1800_v7, %v1804_v6  ;;  %v1269_v36 = vsel %vm1265_vm8, %v1804_v6, %v1805_v24 }
  0xad   :  { %v1273_v19 = vpack.c.bf16 %v1270_v15, %v1270_v15  ;;  %v1810_v25 = vunpack.i.h.bf16 %v1808_v8  ;;  %v1809_v26 = vunpack.i.l.bf16 %v1808_v8 }
  0xae   :  { %1658 = vmatmul.mubr.msk.bf16.vlgmr.msra.gmra.mxu0 %vm87_vm3, %v584_v10  ;;  %1660 = vmatmul.mubr.msk.bf16.vlgmr.msra.gmra.mxu1 %vm87_vm3, %v584_v10  ;;  %v1093_v10 = vpack.c.bf16 %v1092_v3, %v1092_v3  ;;  %v1457_v3 = vld [vmem:[%s2218_s1 + $0x40] sm:$0xff] }
  0xaf   :  { %779 = vmatpush1.bf16.msra.mxu0 %v747_v27  ;;  %820 = vmatpush1.bf16.msra.mxu1 %v753_v28  ;;  %v1099_v27 = vld [vmem:[%s2218_s1 + $0x30] sm:$0xff]  ;;  %v1264_v28 = vpop.permute.xlu1 %1263  ;;  %v1268_v30 = vsel %vm1265_vm8, %v1805_v24, %v1809_v26  ;;  %v1458_v22 = vpack.c.bf16 %v1457_v3, %v1457_v3 }
  0xb0   :  { %796 = vmatprep.mubr.bf16.mxu0 %v1834_v14  ;;  %837 = vmatprep.mubr.bf16.mxu1 %v1834_v14  ;;  %v1105_v16 = vsel %vm91_vm1, %v1093_v10, 0  ;;  %v1813_v23 = vpop.permute.xlu0 %1812  ;;  %v1100_v1 = vpack.c.bf16 %v1099_v27, %v1099_v27  ;;  %v1266_v31 = vsel %vm1265_vm8, %v1810_v25, %v1264_v28  ;;  %v1275_v35 = vpack.c.bf16 %v1268_v30, %v1268_v30 }
  0xb1   :  { %1671 = vmatprep.subr.msk.bf16.mxu0 %vm91_vm1, %v1666_v0  ;;  %1673 = vmatprep.subr.msk.bf16.mxu1 %vm91_vm1, %v915_v29  ;;  %v1097_v29 = vpack.c.bf16 %v1088_v20, %v1088_v20  ;;  %v1272_v0 = vpack.c.bf16 %v1271_v21, %v1271_v21  ;;  %v1277_v9 = vpack.c.bf16 %v1266_v31, %v1266_v31  ;;  %v1815_v38 = vunpack.i.h.bf16 %v1813_v23 }
  0xb2   :  { %v1814_v2 = vunpack.i.l.bf16 %v1813_v23 }
  0xb3   :  { %v1117_v33 = vsel %vm91_vm1, %v1097_v29, 0  ;;  %v1284_v34 = vsel %vm91_vm1, %v1272_v0, 0 }
  0xb4   :  { %v1818_v32 = vpop.permute.xlu0 %1817  ;;  %v1450_v54 = vsel %vm1444_vm9, %v1814_v2, %v1815_v38 }
  0xb5   :  { %v1820_v39 = vunpack.i.h.bf16 %v1818_v32  ;;  %v1819_v40 = vunpack.i.l.bf16 %v1818_v32  ;;  %v1451_v58 = vpack.c.bf16 %v1450_v54, %v1450_v54 }
  0xb6   :  { %1668 = vmatmul.mubr.msk.bf16.vlgmr.msra.gmra.mxu0 %vm87_vm3, %v742_v37  ;;  %1670 = vmatmul.mubr.msk.bf16.vlgmr.msra.gmra.mxu1 %vm87_vm3, %v742_v37 }
  0xb7   :  { %861 = vmatpush1.bf16.msra.mxu0 %v759_v41  ;;  %958 = vmatpush1.bf16.msra.mxu1 %v926_v42  ;;  %v1278_v41 = vld [vmem:[%s2218_s1 + $0x38] sm:$0xff]  ;;  %v1435_v42 = vpop.permute.xlu1 %1434  ;;  %v1447_v46 = vsel %vm1444_vm9, %v1819_v40, %v1820_v39 }
  0xb8   :  { %878 = vmatprep.mubr.bf16.mxu0 %v1834_v14  ;;  %975 = vmatprep.mubr.bf16.mxu1 %v1834_v14  ;;  %v1279_v45 = vpack.c.bf16 %v1278_v41, %v1278_v41  ;;  %v1449_v47 = vsel %vm1444_vm9, %v1815_v38, %v1435_v42  ;;  %v1454_v51 = vpack.c.bf16 %v1447_v46, %v1447_v46 }
  0xb9   :  { %1675 = vmatprep.subr.msk.bf16.mxu0 %vm91_vm1, %v917_v43  ;;  %1677 = vmatprep.subr.msk.bf16.mxu1 %vm91_vm1, %v919_v44  ;;  %v1274_v43 = vpack.c.bf16 %v1269_v36, %v1269_v36  ;;  %v1448_v52 = vsel %vm1444_vm9, %v1435_v42, %v1819_v40  ;;  %v1452_v53 = vpack.c.bf16 %v1449_v47, %v1449_v47 }
  0xba   :  { %v1453_v57 = vpack.c.bf16 %v1448_v52, %v1448_v52 }
  0xbb   :  { %v1823_v48 = vpop.permute.xlu1 %1822  ;;  %v1290_v49 = vsel %vm91_vm1, %v1274_v43, 0 }
  0xbc   :  { %v1824_v56 = vunpack.i.l.bf16 %v1823_v48 }
  0xbe   :  { %1672 = vmatmul.mubr.msk.bf16.vlgmr.msra.gmra.mxu0 %vm87_vm3, %v742_v37  ;;  %1674 = vmatmul.mubr.msk.bf16.vlgmr.msra.gmra.mxu1 %vm87_vm3, %v921_v55  ;;  %v1267_v37 = vsel %vm1265_vm8, %v1809_v26, %v1810_v25 }
  0xbf   :  { %999 = vmatpush1.bf16.msra.mxu0 %v932_v60  ;;  %1040 = vmatpush1.bf16.msra.mxu1 %v938_v61  ;;  %v1276_v44 = vpack.c.bf16 %v1267_v37, %v1267_v37  ;;  %v1463_v60 = vsel %vm91_vm1, %v1451_v58, 0  ;;  %v1469_v61 = vsel %vm91_vm1, %v1453_v57, 0 }
  0xc0   :  { %1016 = vmatprep.mubr.bf16.mxu0 %v1834_v14  ;;  %1057 = vmatprep.mubr.bf16.mxu1 %v1834_v14 }
  0xc1   :  { %1679 = vmatprep.subr.msk.bf16.mxu0 %vm91_vm1, %v1094_v62  ;;  %1681 = vmatprep.subr.msk.bf16.mxu1 %vm91_vm1, %v1096_v63  ;;  %v1296_v50 = vsel %vm91_vm1, %v1276_v44, 0  ;;  %v1446_v62 = vsel %vm1444_vm9, %v1820_v39, %v1824_v56 }
  0xc2   :  { %v1455_v4 = vpack.c.bf16 %v1446_v62, %v1446_v62 }
  0xc4   :  { %v1475_v5 = vsel %vm91_vm1, %v1455_v4, 0 }
  0xc6   :  { %1676 = vmatmul.mubr.msk.bf16.vlgmr.msra.gmra.mxu0 %vm87_vm3, %v921_v55  ;;  %1678 = vmatmul.mubr.msk.bf16.vlgmr.msra.gmra.mxu1 %vm87_vm3, %v921_v55  ;;  %v1825_v55 = vunpack.i.h.bf16 %v1823_v48 }
  0xc7   :  { %1137 = vmatpush1.bf16.msra.mxu0 %v1105_v16  ;;  %1178 = vmatpush1.bf16.msra.mxu1 %v1111_v17 }
  0xc8   :  { %1154 = vmatprep.mubr.bf16.mxu0 %v1834_v14  ;;  %1195 = vmatprep.mubr.bf16.mxu1 %v1834_v14  ;;  %v1445_v59 = vsel %vm1444_vm9, %v1824_v56, %v1825_v55 }
  0xc9   :  { %1683 = vmatprep.subr.msk.bf16.mxu0 %vm91_vm1, %v1098_v18  ;;  %1685 = vmatprep.subr.msk.bf16.mxu1 %vm91_vm1, %v1273_v19  ;;  %v1456_v63 = vpack.c.bf16 %v1445_v59, %v1445_v59 }
  0xce   :  { %1680 = vmatmul.mubr.msk.bf16.vlgmr.msra.gmra.mxu0 %vm87_vm3, %v1100_v1  ;;  %1682 = vmatmul.mubr.msk.bf16.vlgmr.msra.gmra.mxu1 %vm87_vm3, %v1100_v1 }
  0xcf   :  { %1219 = vmatpush1.bf16.msra.mxu0 %v1117_v33  ;;  %1316 = vmatpush1.bf16.msra.mxu1 %v1284_v34 }
  0xd0   :  { %1236 = vmatprep.mubr.bf16.mxu0 %v1834_v14  ;;  %1333 = vmatprep.mubr.bf16.mxu1 %v1834_v14 }
  0xd1   :  { %1687 = vmatprep.subr.msk.bf16.mxu0 %vm91_vm1, %v1275_v35  ;;  %1689 = vmatprep.subr.msk.bf16.mxu1 %vm91_vm1, %v1277_v9 }
  0xd6   :  { %1684 = vmatmul.mubr.msk.bf16.vlgmr.msra.gmra.mxu0 %vm87_vm3, %v1100_v1  ;;  %1686 = vmatmul.mubr.msk.bf16.vlgmr.msra.gmra.mxu1 %vm87_vm3, %v1279_v45 }
  0xd7   :  { %1357 = vmatpush1.bf16.msra.mxu0 %v1290_v49  ;;  %1398 = vmatpush1.bf16.msra.mxu1 %v1296_v50 }
  0xd8   :  { %1374 = vmatprep.mubr.bf16.mxu0 %v1834_v14  ;;  %1415 = vmatprep.mubr.bf16.mxu1 %v1834_v14 }
  0xd9   :  { %1691 = vmatprep.subr.msk.bf16.mxu0 %vm91_vm1, %v1452_v53  ;;  %1693 = vmatprep.subr.msk.bf16.mxu1 %vm91_vm1, %v1454_v51 }
  0xde   :  { %1688 = vmatmul.mubr.msk.bf16.vlgmr.msra.gmra.mxu0 %vm87_vm3, %v1279_v45  ;;  %1690 = vmatmul.mubr.msk.bf16.vlgmr.msra.gmra.mxu1 %vm87_vm3, %v1279_v45 }
  0xdf   :  { %1495 = vmatpush1.bf16.msra.mxu0 %v1463_v60  ;;  %1536 = vmatpush1.bf16.msra.mxu1 %v1469_v61 }
  0xe0   :  { %1512 = vmatprep.mubr.bf16.mxu0 %v1834_v14  ;;  %1553 = vmatprep.mubr.bf16.mxu1 %v1834_v14 }
  0xe1   :  { %1695 = vmatprep.subr.msk.bf16.mxu0 %vm91_vm1, %v1456_v63 }
  0xe6   :  { %1692 = vmatmul.mubr.msk.bf16.vlgmr.msra.gmra.mxu0 %vm87_vm3, %v1458_v22  ;;  %1694 = vmatmul.mubr.msk.bf16.vlgmr.msra.gmra.mxu1 %vm87_vm3, %v1458_v22 }
  0xe7   :  { %1577 = vmatpush1.bf16.msra.mxu0 %v1475_v5  ;;  %1594 = vmatprep.mubr.bf16.mxu0 %v1834_v14 }
  0xee   :  { %1696 = vmatmul.mubr.msk.bf16.vlgmr.msra.gmra.mxu0 %vm87_vm3, %v1458_v22 }
 0x146   :  { %v144_v6 = vpop.f32.mrf.mxu0  ;;  %v185_v7 = vpop.f32.mrf.mxu1 }
 0x148   :  { %v146_v8 = vpop.f32.mrf.mxu0  ;;  %v187_v10 = vpop.f32.mrf.mxu1 }
 0x14a   :  { %v148_v11 = vpop.f32.mrf.mxu0  ;;  %v189_v12 = vpop.f32.mrf.mxu1 }
 0x14c   :  { %v149_v13 = vpop.f32.mrf.mxu0  ;;  %v190_v15 = vpop.f32.mrf.mxu1 }
 0x14e   :  { %v226_v16 = vpop.f32.mrf.mxu0  ;;  %v288_v17 = vpop.f32.mrf.mxu1 }
 0x14f   :  { %v2147_v18 = vadd.f32 %v288_v17, %v144_v6 }
 0x150   :  { %v228_v19 = vpop.f32.mrf.mxu0  ;;  %v290_v20 = vpop.f32.mrf.mxu1 }
 0x151   :  { %v2149_v21 = vadd.f32 %v290_v20, %v146_v8 }
 0x152   :  { %v230_v23 = vpop.f32.mrf.mxu0  ;;  %v292_v14 = vpop.f32.mrf.mxu1 }
 0x154   :  { %v231_v24 = vpop.f32.mrf.mxu0  ;;  %v293_v25 = vpop.f32.mrf.mxu1 }
 0x156   :  { %v329_v26 = vpop.f32.mrf.mxu0  ;;  %v370_v27 = vpop.f32.mrf.mxu1 }
 0x157   :  { %v2151_v28 = vadd.f32 %v329_v26, %v185_v7  ;;  %v2153_v29 = vadd.f32 %v370_v27, %v226_v16 }
 0x158   :  { %v331_v0 = vpop.f32.mrf.mxu0  ;;  %v372_v1 = vpop.f32.mrf.mxu1 }
 0x159   :  { %v2155_v30 = vadd.f32 %v331_v0, %v187_v10  ;;  %v2157_v31 = vadd.f32 %v372_v1, %v228_v19 }
 0x15a   :  { %v333_v32 = vpop.f32.mrf.mxu0  ;;  %v374_v33 = vpop.f32.mrf.mxu1 }
 0x15c   :  { %v334_v34 = vpop.f32.mrf.mxu0  ;;  %v375_v35 = vpop.f32.mrf.mxu1 }
 0x15e   :  { %v461_v9 = vpop.f32.mrf.mxu0  ;;  %v502_v36 = vpop.f32.mrf.mxu1 }
 0x160   :  { %v2159_v37 = vpop.f32.mrf.mxu0  ;;  %v2161_v38 = vpop.f32.mrf.mxu1 }
 0x162   :  { %v465_v39 = vpop.f32.mrf.mxu0  ;;  %v506_v40 = vpop.f32.mrf.mxu1 }
 0x164   :  { %v466_v41 = vpop.f32.mrf.mxu0  ;;  %v507_v42 = vpop.f32.mrf.mxu1 }
 0x166   :  { %v2163_v43 = vpop.f32.mrf.mxu0  ;;  %v640_v44 = vpop.f32.mrf.mxu1 }
 0x168   :  { %v2165_v2 = vpop.f32.mrf.mxu0  ;;  %v642_v45 = vpop.f32.mrf.mxu1 }
 0x16a   :  { %v547_v46 = vpop.f32.mrf.mxu0  ;;  %v644_v47 = vpop.f32.mrf.mxu1 }
 0x16b   :  { %v550_v46 = vadd.f32 %v461_v9, %v2147_v18  ;;  %v552_v47 = vadd.f32 %v502_v36, %v2151_v28 }
 0x16c   :  { %v548_v48 = vpop.f32.mrf.mxu0  ;;  %v645_v49 = vpop.f32.mrf.mxu1 }
 0x16e   :  { %v681_v50 = vpop.f32.mrf.mxu0  ;;  %v2167_v51 = vpop.f32.mrf.mxu1 }
 0x170   :  { %v683_v52 = vpop.f32.mrf.mxu0  ;;  %v2169_v53 = vpop.f32.mrf.mxu1 }
 0x172   :  { %v685_v54 = vpop.f32.mrf.mxu0  ;;  %v726_v55 = vpop.f32.mrf.mxu1 }
 0x173   :  { %v551_v54 = vadd.f32 %v2159_v37, %v2149_v21  ;;  %v553_v55 = vadd.f32 %v2161_v38, %v2155_v30  ;;  %v554_v21 = vadd.f32 %v2163_v43, %v2153_v29 }
 0x174   :  { %v686_v56 = vpop.f32.mrf.mxu0  ;;  %v727_v57 = vpop.f32.mrf.mxu1 }
 0x175   :  { %v729_v56 = vadd.f32 %v640_v44, %v550_v46  ;;  %v731_v57 = vadd.f32 %v681_v50, %v552_v47 }
 0x176   :  { %v798_v58 = vpop.f32.mrf.mxu0  ;;  %v839_v59 = vpop.f32.mrf.mxu1 }
 0x178   :  { %v800_v60 = vpop.f32.mrf.mxu0  ;;  %v841_v61 = vpop.f32.mrf.mxu1 }
 0x17a   :  { %v802_v62 = vpop.f32.mrf.mxu0  ;;  %v843_v63 = vpop.f32.mrf.mxu1 }
 0x17c   :  { %v803_v3 = vpop.f32.mrf.mxu0  ;;  %v844_v4 = vpop.f32.mrf.mxu1 }
 0x17d   :  { %v730_v3 = vadd.f32 %v642_v45, %v551_v54  ;;  %v732_v4 = vadd.f32 %v683_v52, %v553_v55  ;;  %v555_v45 = vadd.f32 %v2165_v2, %v2157_v31  ;;  %v733_v52 = vadd.f32 %v2167_v51, %v554_v21 }
 0x17e   :  { %v2171_v22 = vpop.f32.mrf.mxu0  ;;  %v977_v5 = vpop.f32.mrf.mxu1 }
 0x17f   :  { %v888_v9 = vadd.f32 %v800_v60, %v730_v3  ;;  %v890_v28 = vadd.f32 %v841_v61, %v732_v4  ;;  %v734_v29 = vadd.f32 %v2169_v53, %v555_v45  ;;  %v891_v43 = vadd.f32 %v2171_v22, %v733_v52 }
 0x180   :  { %v2173_v6 = vpop.f32.mrf.mxu0  ;;  %v979_v7 = vpop.f32.mrf.mxu1 }
 0x181   :  { %v1067_v30 = vadd.f32 %v979_v7, %v888_v9  ;;  %v892_v31 = vadd.f32 %v2173_v6, %v734_v29 }
 0x182   :  { %v884_v8 = vpop.f32.mrf.mxu0  ;;  %v981_v10 = vpop.f32.mrf.mxu1 }
 0x183   :  { %v887_v8 = vadd.f32 %v798_v58, %v729_v56  ;;  %v889_v10 = vadd.f32 %v839_v59, %v731_v57 }
 0x184   :  { %v885_v11 = vpop.f32.mrf.mxu0  ;;  %v982_v12 = vpop.f32.mrf.mxu1 }
 0x185   :  { %v1066_v36 = vadd.f32 %v977_v5, %v887_v8 }
 0x186   :  { %v1018_v13 = vpop.f32.mrf.mxu0  ;;  %v2175_v15 = vpop.f32.mrf.mxu1 }
 0x187   :  { %v1068_v12 = vadd.f32 %v1018_v13, %v889_v10  ;;  %v1070_v2 = vadd.f32 %v2175_v15, %v891_v43 }
 0x188   :  { %v1020_v16 = vpop.f32.mrf.mxu0  ;;  %v2177_v17 = vpop.f32.mrf.mxu1 }
 0x189   :  { %v1069_v38 = vadd.f32 %v1020_v16, %v890_v28  ;;  %v1071_v53 = vadd.f32 %v2177_v17, %v892_v31 }
 0x18a   :  { %v1022_v19 = vpop.f32.mrf.mxu0  ;;  %v1063_v20 = vpop.f32.mrf.mxu1 }
 0x18b   :  { %v1613_v20 = vpop.permute.xlu0 %1612 }
 0x18c   :  { %v1023_v23 = vpop.f32.mrf.mxu0  ;;  %v1064_v14 = vpop.f32.mrf.mxu1 }
 0x18e   :  { %v1156_v24 = vpop.f32.mrf.mxu0  ;;  %v1197_v25 = vpop.f32.mrf.mxu1 }
 0x18f   :  { %v1245_v44 = vadd.f32 %v1156_v24, %v1066_v36  ;;  %v1247_v50 = vadd.f32 %v1197_v25, %v1068_v12 }
 0x190   :  { %v1158_v26 = vpop.f32.mrf.mxu0  ;;  %v1199_v27 = vpop.f32.mrf.mxu1 }
 0x191   :  { %v1246_v60 = vadd.f32 %v1158_v26, %v1067_v30  ;;  %v1248_v61 = vadd.f32 %v1199_v27, %v1069_v38 }
 0x192   :  { %v1160_v0 = vpop.f32.mrf.mxu0  ;;  %v1201_v1 = vpop.f32.mrf.mxu1 }
 0x194   :  { %v1161_v32 = vpop.f32.mrf.mxu0  ;;  %v1202_v33 = vpop.f32.mrf.mxu1 }
 0x196   :  { %v1238_v34 = vpop.f32.mrf.mxu0  ;;  %v1335_v35 = vpop.f32.mrf.mxu1 }
 0x197   :  { %v1424_v5 = vadd.f32 %v1335_v35, %v1245_v44  ;;  %v1249_v33 = vadd.f32 %v1238_v34, %v1070_v2 }
 0x198   :  { %v2179_v39 = vpop.f32.mrf.mxu0  ;;  %v1337_v40 = vpop.f32.mrf.mxu1 }
 0x199   :  { %v1425_v23 = vadd.f32 %v1337_v40, %v1246_v60  ;;  %v1250_v6 = vadd.f32 %v2179_v39, %v1071_v53 }
 0x19a   :  { %v1242_v41 = vpop.f32.mrf.mxu0  ;;  %v1339_v42 = vpop.f32.mrf.mxu1 }
 0x19c   :  { %v1243_v48 = vpop.f32.mrf.mxu0  ;;  %v1340_v49 = vpop.f32.mrf.mxu1 }
 0x19e   :  { %v1376_v62 = vpop.f32.mrf.mxu0  ;;  %v1417_v63 = vpop.f32.mrf.mxu1 }
 0x19f   :  { %v1426_v13 = vadd.f32 %v1376_v62, %v1247_v50  ;;  %v1428_v15 = vadd.f32 %v1417_v63, %v1249_v33 }
 0x1a0   :  { %v1378_v11 = vpop.f32.mrf.mxu0  ;;  %v1419_v18 = vpop.f32.mrf.mxu1 }
 0x1a1   :  { %v1427_v14 = vadd.f32 %v1378_v11, %v1248_v61  ;;  %v1429_v54 = vadd.f32 %v1419_v18, %v1250_v6 }
 0x1a2   :  { %v1380_v37 = vpop.f32.mrf.mxu0  ;;  %v1421_v19 = vpop.f32.mrf.mxu1 }
 0x1a4   :  { %v1381_v58 = vpop.f32.mrf.mxu0  ;;  %v1422_v59 = vpop.f32.mrf.mxu1 }
 0x1a6   :  { %v1514_v7 = vpop.f32.mrf.mxu0  ;;  %v1555_v16 = vpop.f32.mrf.mxu1 }
 0x1a7   :  { %v1603_v24 = vadd.f32 %v1514_v7, %v1424_v5  ;;  %v1605_v25 = vadd.f32 %v1555_v16, %v1426_v13 }
 0x1a8   :  { %v1516_v51 = vpop.f32.mrf.mxu0  ;;  %v1557_v26 = vpop.f32.mrf.mxu1 }
 0x1a9   :  { %v1615_v27 = vadd.f32 %v1613_v20, %v1603_v24  ;;  %v1617_v0 = vadd.f32 %v1613_v20, %v1605_v25  ;;  %v1604_v1 = vadd.f32 %v1516_v51, %v1425_v23  ;;  %v1606_v32 = vadd.f32 %v1557_v26, %v1427_v14 }
 0x1aa   :  { %v1518_v22 = vpop.f32.mrf.mxu0  ;;  %v1559_v35 = vpop.f32.mrf.mxu1 }
 0x1ab   :  { %v1621_v41 = vmax.f32 %v1615_v27, 0.0  ;;  %v1623_v40 = vmax.f32 %v1617_v0, 0.0  ;;  %v1616_v42 = vadd.f32 %v1613_v20, %v1604_v1  ;;  %v1618_v46 = vadd.f32 %v1613_v20, %v1606_v32 }
 0x1ac   :  { %v1519_v47 = vpop.f32.mrf.mxu0  ;;  %v1560_v48 = vpop.f32.mrf.mxu1 }
 0x1ad   :  { %1627 = vst [vmem:[%s2219_s3] sm:$0xff] %v1621_v41  ;;  %1629 = vst [vmem:[%s2219_s3 + $0x10] sm:$0xff] %v1623_v40  ;;  %v1622_v17 = vmax.f32 %v1616_v42, 0.0  ;;  %v1624_v34 = vmax.f32 %v1618_v46, 0.0 }
 0x1ae   :  { %v1596_v49 = vpop.f32.mrf.mxu0 }
 0x1af   :  { %1628 = vst [vmem:[%s2219_s3 + $0x8] sm:$0xff] %v1622_v17  ;;  %1630 = vst [vmem:[%s2219_s3 + $0x18] sm:$0xff] %v1624_v34  ;;  %v1607_v39 = vadd.f32 %v1596_v49, %v1428_v15 }
 0x1b0   :  { %v1598_v55 = vpop.f32.mrf.mxu0 }
 0x1b1   :  { %v1619_v56 = vadd.f32 %v1613_v20, %v1607_v39  ;;  %v1608_v57 = vadd.f32 %v1598_v55, %v1429_v54 }
 0x1b2   :  { %v1600_v62 = vpop.f32.mrf.mxu0 }
 0x1b3   :  { %v1625_v63 = vmax.f32 %v1619_v56, 0.0  ;;  %v1620_v3 = vadd.f32 %v1613_v20, %v1608_v57 }
 0x1b4   :  { %v1601_v4 = vpop.f32.mrf.mxu0 }
 0x1b5   :  { %1631 = vst [vmem:[%s2219_s3 + $0x20] sm:$0xff] %v1625_v63  ;;  %v1626_v8 = vmax.f32 %v1620_v3, 0.0 }
 0x1b7   :  { %1632 = vst [vmem:[%s2219_s3 + $0x28] sm:$0xff] %v1626_v8 }

</bundles_post_ra>
